<compile_context>
chip_gen: v7x
topology: tpu7x:2x2x1
jax: 0.10.0
libtpu: 0.0.40
codegen_flags: <defaults>
</compile_context>

<pallas_src>
import functools

import jax
import jax.numpy as jnp
from jax.experimental import pallas as pl
from jax.experimental.pallas import tpu as pltpu


# ----------------------------------------------------------------------------
# Pallas kernels
# ----------------------------------------------------------------------------
def conv_fused_kernel(lens_ref, tidx_ref, slabs_ref, w_ref, b_ref, out_ref,
                      *, taps, apply_relu):
    """Fused conv + bias (+ ReLU) + seq-length mask for one batch element.

    lens_ref  : (B,)    int32 in SMEM (scalar prefetch) -- NEW seq lengths
    tidx_ref  : (1, L)  int32 -- time (W) index of each flattened output column
    slabs_ref : (1, n_slabs, Cin, S)  stride-phase slabs, rows flattened (Hs*Ws)
    w_ref     : (KH*KW, Cout, Cin)    per-tap weight matrices
    b_ref     : (Cout, 1)             bias
    out_ref   : (1, Cout, L)          L = Ho*Ws (lane-dense flattened output)
    taps      : static tuple of (slab_index, lane_offset, tap_index)
    """
    b = pl.program_id(0)
    cout = w_ref.shape[1]
    l = out_ref.shape[2]

    acc = jnp.zeros((cout, l), jnp.float32)
    for slab_idx, off, tap in taps:
        # Contiguous lane window of the flattened slab = shifted view of the
        # padded input for this kernel tap (no in-kernel reshape / im2col).
        x_t = slabs_ref[0, slab_idx, :, off:off + l]                # (Cin, L)
        acc = acc + jnp.dot(w_ref[tap], x_t,
                            preferred_element_type=jnp.float32)     # MXU

    acc = acc + b_ref[...]                                          # (Cout, 1) bcast
    if apply_relu:
        acc = jnp.maximum(acc, 0.0)
    # zero out time positions >= this batch element's sequence length
    acc = jnp.where(tidx_ref[...] < lens_ref[b], acc, 0.0)
    out_ref[0] = acc.astype(out_ref.dtype)


def relu_mask_kernel(lens_ref, x_ref, out_ref):
    """Fallback ReLU + time mask (only used if a ReLU does not follow a conv)."""
    b = pl.program_id(0)
    x = x_ref[...]                                                  # (1, C, H, W)
    t = jax.lax.broadcasted_iota(jnp.int32, x.shape, 3)
    out_ref[...] = jnp.where(t < lens_ref[b], jnp.maximum(x, 0.0), 0.0
                             ).astype(out_ref.dtype)


# ----------------------------------------------------------------------------
# Wrappers (plain JAX glue + pallas_call)
# ----------------------------------------------------------------------------
def _conv_seq_lengths(lens, kw, sw, pw, dw=1):
    # matches: ((L + 2*p - d*(k-1) - 1).float() / s).int() + 1   (L >= 0)
    numer = lens + 2 * pw - dw * (kw - 1) - 1
    return (numer // sw + 1).astype(jnp.int32)


def conv2d_relu_masked(x, lens_new, weight, bias, stride, padding,
                       *, apply_relu, compute_dtype=jnp.bfloat16):
    """Conv2d (+ fused ReLU) + per-batch time masking, one Pallas kernel."""
    B, Cin, H, W = x.shape
    Cout, Cin_w, KH, KW = weight.shape
    assert Cin_w == Cin
    sh, sw = stride
    ph, pw = padding

    Ho = (H + 2 * ph - KH) // sh + 1
    Wo = (W + 2 * pw - KW) // sw + 1
    # Per-phase slab extents. The +1 row guarantees every shifted view
    # (offset up to ((KH-1)//sh)*Ws + (KW-1)//sw) stays inside the slab.
    Hs = Ho + (KH - 1) // sh + 1
    Ws = Wo + (KW - 1) // sw
    Hp = max(Hs * sh, H + ph)
    Wp = max(Ws * sw, W + pw)
    S = Hs * Ws                      # flattened slab length
    L = Ho * Ws                      # flattened output length (row pitch Ws >= Wo)

    xp = jnp.pad(x, ((0, 0), (0, 0), (ph, Hp - H - ph), (pw, Wp - W - pw)))

    # Stride-phase decomposition: a *partition* of the padded input (~1x bytes
    # in HBM instead of the previous KH*KW x im2col expansion).
    slab_list = []
    for rh in range(sh):
        for rw in range(sw):
            s = xp[:, :, rh::sh, rw::sw][:, :, :Hs, :Ws]            # (B, Cin, Hs, Ws)
            slab_list.append(s.reshape(B, Cin, S))
    n_slabs = len(slab_list)
    slabs = jnp.stack(slab_list, axis=1).astype(compute_dtype)      # (B, n_slabs, Cin, S)

    # Static tap table: (slab index, lane offset in slab, tap index).
    taps = tuple(((i % sh) * sw + (j % sw), (i // sh) * Ws + (j // sw), i * KW + j)
                 for i in range(KH) for j in range(KW))

    w_taps = jnp.transpose(weight.reshape(Cout, Cin, KH * KW), (2, 0, 1))
    w_taps = w_taps.astype(compute_dtype)                           # (KH*KW, Cout, Cin)
    b2 = bias.reshape(Cout, 1).astype(jnp.float32)
    # Precomputed time index of each flattened output column (p -> p % Ws,
    # built once on the host side instead of an in-kernel modulo).
    tidx = jnp.tile(jnp.arange(Ws, dtype=jnp.int32), Ho)[None, :]   # (1, L)

    out = pl.pallas_call(
        functools.partial(conv_fused_kernel, taps=taps, apply_relu=apply_relu),
        out_shape=jax.ShapeDtypeStruct((B, Cout, L), jnp.float32),
        grid_spec=pltpu.PrefetchScalarGridSpec(
            num_scalar_prefetch=1,
            grid=(B,),
            in_specs=[
                pl.BlockSpec((1, L), lambda b, lref: (0, 0)),                    # tidx
                pl.BlockSpec((1, n_slabs, Cin, S), lambda b, lref: (b, 0, 0, 0)),# slabs
                pl.BlockSpec((KH * KW, Cout, Cin), lambda b, lref: (0, 0, 0)),   # weights
                pl.BlockSpec((Cout, 1), lambda b, lref: (0, 0)),                 # bias
            ],
            out_specs=pl.BlockSpec((1, Cout, L), lambda b, lref: (b, 0, 0)),
        ),
        compiler_params=pltpu.CompilerParams(
            dimension_semantics=("parallel",)),   # megacore sharding on v7x
    )(lens_new, tidx, slabs, w_taps, b2)

    # (B, Cout, L) -> (B, Cout, Ho, Ws) is a free reshape; drop the Ws-Wo
    # scratch columns that only exist because the matmul uses row pitch Ws.
    out = out.reshape(B, Cout, Ho, Ws)[:, :, :, :Wo]
    return out


def relu_masked(x, lens):
    """Fallback path; in MaskConv2d stacks every ReLU follows a Conv2d and is
    fused into conv2d_relu_masked, so this is not used on the hot path."""
    B, C, H, W = x.shape
    return pl.pallas_call(
        relu_mask_kernel,
        out_shape=jax.ShapeDtypeStruct(x.shape, x.dtype),
        grid_spec=pltpu.PrefetchScalarGridSpec(
            num_scalar_prefetch=1,
            grid=(B,),
            in_specs=[pl.BlockSpec((1, C, H, W), lambda b, lref: (b, 0, 0, 0))],
            out_specs=pl.BlockSpec((1, C, H, W), lambda b, lref: (b, 0, 0, 0)),
        ),
        compiler_params=pltpu.CompilerParams(dimension_semantics=("parallel",)),
    )(lens, x)


def mask_conv2d_forward(x, seq_lengths, modules, *, compute_dtype=jnp.bfloat16):
    """Replicates MaskConv2d.forward: apply each module, update seq_lengths,
    zero everything past seq_lengths along the time (last) axis.  ReLUs that
    immediately follow a Conv2d are fused into the conv kernel."""
    out = x
    lens = seq_lengths.astype(jnp.int32)
    idx = 0
    while idx < len(modules):
        mod = modules[idx]
        if mod["type"] == "conv2d":
            fuse_relu = idx + 1 < len(modules) and modules[idx + 1]["type"] == "relu"
            lens = _conv_seq_lengths(lens, mod["kernel"][1], mod["stride"][1],
                                     mod["padding"][1], 1)
            out = conv2d_relu_masked(out, lens, mod["weight"], mod["bias"],
                                     mod["stride"], mod["padding"],
                                     apply_relu=fuse_relu,
                                     compute_dtype=compute_dtype)
            idx += 2 if fuse_relu else 1
        elif mod["type"] == "relu":
            out = relu_masked(out, lens)   # lengths unchanged by ReLU
            idx += 1
        else:
            # TODO(synk): MaxPool2d (lens >>= 1) / BatchNorm2d branches not built.
            raise ValueError(mod["type"])
    return out, lens


# ----------------------------------------------------------------------------
# Reference (plain JAX / XLA) for correctness check
# ----------------------------------------------------------------------------
def _ref_forward(x, seq_lengths, modules):
    out = x
    lens = seq_lengths.astype(jnp.int32)
    for mod in modules:
        if mod["type"] == "conv2d":
            out = jax.lax.conv_general_dilated(
                out, mod["weight"], window_strides=mod["stride"],
                padding=[(mod["padding"][0],) * 2, (mod["padding"][1],) * 2],
                dimension_numbers=("NCHW", "OIHW", "NCHW"),
            ) + mod["bias"][None, :, None, None]
            lens = _conv_seq_lengths(lens, mod["kernel"][1], mod["stride"][1],
                                     mod["padding"][1], 1)
        elif mod["type"] == "relu":
            out = jnp.maximum(out, 0.0)
        else:
            raise ValueError(mod["type"])
        T = out.shape[3]
        m = jnp.arange(T, dtype=jnp.int32)[None, None, None, :] < lens[:, None, None, None]
        out = jnp.where(m, out, 0.0)
    return out, lens


# ----------------------------------------------------------------------------
# Main
# ----------------------------------------------------------------------------
if __name__ == "__main__":
    key = jax.random.PRNGKey(0)
    k_x, k_w1, k_b1, k_w2, k_b2 = jax.random.split(key, 5)

    B, Cin, H, T = 2, 4, 16, 16
    x = jax.random.normal(k_x, (B, Cin, H, T), dtype=jnp.float32)
    seq_lengths = jnp.array([16, 11], dtype=jnp.int32)

    # Sequential: Conv2d(4->8, k=3, s=2, p=1) -> ReLU -> Conv2d(8->8, k=3, s=1, p=1) -> ReLU
    C1, C2 = 8, 8
    fan1 = Cin * 3 * 3
    fan2 = C1 * 3 * 3
    modules = [
        dict(type="conv2d",
             weight=jax.random.uniform(k_w1, (C1, Cin, 3, 3), jnp.float32,
                                       -1.0, 1.0) / jnp.sqrt(fan1),
             bias=jax.random.uniform(k_b1, (C1,), jnp.float32, -1.0, 1.0) / jnp.sqrt(fan1),
             kernel=(3, 3), stride=(2, 2), padding=(1, 1)),
        dict(type="relu"),
        dict(type="conv2d",
             weight=jax.random.uniform(k_w2, (C2, C1, 3, 3), jnp.float32,
                                       -1.0, 1.0) / jnp.sqrt(fan2),
             bias=jax.random.uniform(k_b2, (C2,), jnp.float32, -1.0, 1.0) / jnp.sqrt(fan2),
             kernel=(3, 3), stride=(1, 1), padding=(1, 1)),
        dict(type="relu"),
    ]

    ref_out, ref_lens = _ref_forward(x, seq_lengths, modules)

    # ---- f32 compute path: tight correctness check against the XLA reference
    out_f32, lens_f32 = mask_conv2d_forward(x, seq_lengths, modules,
                                            compute_dtype=jnp.float32)
    out_f32 = jax.block_until_ready(out_f32)
    lens_f32 = jax.block_until_ready(lens_f32)
    assert out_f32.shape == ref_out.shape, (out_f32.shape, ref_out.shape)
    assert jnp.array_equal(lens_f32, ref_lens), (lens_f32, ref_lens)
    assert jnp.allclose(out_f32, ref_out, atol=2e-4, rtol=2e-4), \
        float(jnp.max(jnp.abs(out_f32 - ref_out)))

    # ---- bf16 MXU path (default; v6e/v7x guidance): f32 accumulation, looser tol
    out_bf16, lens_bf16 = mask_conv2d_forward(x, seq_lengths, modules)
    out_bf16 = jax.block_until_ready(out_bf16)
    lens_bf16 = jax.block_until_ready(lens_bf16)
    assert out_bf16.shape == ref_out.shape, (out_bf16.shape, ref_out.shape)
    assert jnp.array_equal(lens_bf16, ref_lens), (lens_bf16, ref_lens)
    assert jnp.allclose(out_bf16, ref_out, atol=5e-2, rtol=5e-2), \
        float(jnp.max(jnp.abs(out_bf16 - ref_out)))

    print("KERNEL_OK")
</pallas_src>

<mosaic_0001>
module attributes {stable_mosaic.version = 11 : i64} {
  func.func @conv_fused_kernel(%arg0: i32, %arg1: memref<2xi32, #tpu.memory_space<smem>>, %arg2: memref<1x72xi32, #tpu.memory_space<vmem>>, %arg3: memref<1x4x4x90xf32, #tpu.memory_space<vmem>>, %arg4: memref<9x8x4xf32, #tpu.memory_space<vmem>>, %arg5: memref<8x1xf32, #tpu.memory_space<vmem>>, %arg6: memref<1x8x72xf32, #tpu.memory_space<vmem>>) attributes {dimension_semantics = [#tpu.dimension_semantics<parallel>], iteration_bounds = array<i64: 2>, scalar_prefetch = 1 : i64, scratch_operands = 0 : i64, tpu.core_type = #tpu.core_type<tc>, window_params = [{pipeline_mode = #tpu.pipeline_mode<synchronous>, transform_indices = @transform_0, window_bounds = array<i64: 1, 72>}, {transform_indices = @transform_1, window_bounds = array<i64: 1, 4, 4, 90>}, {pipeline_mode = #tpu.pipeline_mode<synchronous>, transform_indices = @transform_2, window_bounds = array<i64: 9, 8, 4>}, {pipeline_mode = #tpu.pipeline_mode<synchronous>, transform_indices = @transform_3, window_bounds = array<i64: 8, 1>}, {transform_indices = @transform_4, window_bounds = array<i64: 1, 8, 72>}]} {
    %cst = arith.constant 0.000000e+00 : f32
    %0 = vector.broadcast %cst : f32 to vector<8x72xf32>
    %c0 = arith.constant 0 : index
    %c0_0 = arith.constant 0 : index
    %c0_1 = arith.constant 0 : index
    %c0_2 = arith.constant 0 : index
    %1 = vector.load %arg3[%c0, %c0_0, %c0_1, %c0_2] : memref<1x4x4x90xf32, #tpu.memory_space<vmem>>, vector<1x1x4x72xf32>
    %2 = vector.shape_cast %1 : vector<1x1x4x72xf32> to vector<4x72xf32>
    %c0_3 = arith.constant 0 : index
    %c0_4 = arith.constant 0 : index
    %c0_5 = arith.constant 0 : index
    %3 = vector.load %arg4[%c0_3, %c0_4, %c0_5] : memref<9x8x4xf32, #tpu.memory_space<vmem>>, vector<1x8x4xf32>
    %4 = vector.shape_cast %3 : vector<1x8x4xf32> to vector<8x4xf32>
    %cst_6 = arith.constant dense<0.000000e+00> : vector<8x72xf32>
    %5 = tpu.matmul %4, %2, %cst_6 {dimension_numbers = #tpu.dot_dimension_numbers<[1], [0], [0], [1], [0, 0, 1, 1], [], []>} : vector<8x4xf32>, vector<4x72xf32>, vector<8x72xf32> -> vector<8x72xf32>
    %6 = arith.addf %0, %5 : vector<8x72xf32>
    %c0_7 = arith.constant 0 : index
    %c1 = arith.constant 1 : index
    %c0_8 = arith.constant 0 : index
    %c0_9 = arith.constant 0 : index
    %7 = vector.load %arg3[%c0_7, %c1, %c0_8, %c0_9] : memref<1x4x4x90xf32, #tpu.memory_space<vmem>>, vector<1x1x4x72xf32>
    %8 = vector.shape_cast %7 : vector<1x1x4x72xf32> to vector<4x72xf32>
    %c1_10 = arith.constant 1 : index
    %c0_11 = arith.constant 0 : index
    %c0_12 = arith.constant 0 : index
    %9 = vector.load %arg4[%c1_10, %c0_11, %c0_12] : memref<9x8x4xf32, #tpu.memory_space<vmem>>, vector<1x8x4xf32>
    %10 = vector.shape_cast %9 : vector<1x8x4xf32> to vector<8x4xf32>
    %cst_13 = arith.constant dense<0.000000e+00> : vector<8x72xf32>
    %11 = tpu.matmul %10, %8, %cst_13 {dimension_numbers = #tpu.dot_dimension_numbers<[1], [0], [0], [1], [0, 0, 1, 1], [], []>} : vector<8x4xf32>, vector<4x72xf32>, vector<8x72xf32> -> vector<8x72xf32>
    %12 = arith.addf %6, %11 : vector<8x72xf32>
    %c0_14 = arith.constant 0 : index
    %c0_15 = arith.constant 0 : index
    %c0_16 = arith.constant 0 : index
    %c1_17 = arith.constant 1 : index
    %13 = vector.load %arg3[%c0_14, %c0_15, %c0_16, %c1_17] : memref<1x4x4x90xf32, #tpu.memory_space<vmem>>, vector<1x1x4x72xf32>
    %14 = vector.shape_cast %13 : vector<1x1x4x72xf32> to vector<4x72xf32>
    %c2 = arith.constant 2 : index
    %c0_18 = arith.constant 0 : index
    %c0_19 = arith.constant 0 : index
    %15 = vector.load %arg4[%c2, %c0_18, %c0_19] : memref<9x8x4xf32, #tpu.memory_space<vmem>>, vector<1x8x4xf32>
    %16 = vector.shape_cast %15 : vector<1x8x4xf32> to vector<8x4xf32>
    %cst_20 = arith.constant dense<0.000000e+00> : vector<8x72xf32>
    %17 = tpu.matmul %16, %14, %cst_20 {dimension_numbers = #tpu.dot_dimension_numbers<[1], [0], [0], [1], [0, 0, 1, 1], [], []>} : vector<8x4xf32>, vector<4x72xf32>, vector<8x72xf32> -> vector<8x72xf32>
    %18 = arith.addf %12, %17 : vector<8x72xf32>
    %c0_21 = arith.constant 0 : index
    %c2_22 = arith.constant 2 : index
    %c0_23 = arith.constant 0 : index
    %c0_24 = arith.constant 0 : index
    %19 = vector.load %arg3[%c0_21, %c2_22, %c0_23, %c0_24] : memref<1x4x4x90xf32, #tpu.memory_space<vmem>>, vector<1x1x4x72xf32>
    %20 = vector.shape_cast %19 : vector<1x1x4x72xf32> to vector<4x72xf32>
    %c3 = arith.constant 3 : index
    %c0_25 = arith.constant 0 : index
    %c0_26 = arith.constant 0 : index
    %21 = vector.load %arg4[%c3, %c0_25, %c0_26] : memref<9x8x4xf32, #tpu.memory_space<vmem>>, vector<1x8x4xf32>
    %22 = vector.shape_cast %21 : vector<1x8x4xf32> to vector<8x4xf32>
    %cst_27 = arith.constant dense<0.000000e+00> : vector<8x72xf32>
    %23 = tpu.matmul %22, %20, %cst_27 {dimension_numbers = #tpu.dot_dimension_numbers<[1], [0], [0], [1], [0, 0, 1, 1], [], []>} : vector<8x4xf32>, vector<4x72xf32>, vector<8x72xf32> -> vector<8x72xf32>
    %24 = arith.addf %18, %23 : vector<8x72xf32>
    %c0_28 = arith.constant 0 : index
    %c3_29 = arith.constant 3 : index
    %c0_30 = arith.constant 0 : index
    %c0_31 = arith.constant 0 : index
    %25 = vector.load %arg3[%c0_28, %c3_29, %c0_30, %c0_31] : memref<1x4x4x90xf32, #tpu.memory_space<vmem>>, vector<1x1x4x72xf32>
    %26 = vector.shape_cast %25 : vector<1x1x4x72xf32> to vector<4x72xf32>
    %c4 = arith.constant 4 : index
    %c0_32 = arith.constant 0 : index
    %c0_33 = arith.constant 0 : index
    %27 = vector.load %arg4[%c4, %c0_32, %c0_33] : memref<9x8x4xf32, #tpu.memory_space<vmem>>, vector<1x8x4xf32>
    %28 = vector.shape_cast %27 : vector<1x8x4xf32> to vector<8x4xf32>
    %cst_34 = arith.constant dense<0.000000e+00> : vector<8x72xf32>
    %29 = tpu.matmul %28, %26, %cst_34 {dimension_numbers = #tpu.dot_dimension_numbers<[1], [0], [0], [1], [0, 0, 1, 1], [], []>} : vector<8x4xf32>, vector<4x72xf32>, vector<8x72xf32> -> vector<8x72xf32>
    %30 = arith.addf %24, %29 : vector<8x72xf32>
    %c0_35 = arith.constant 0 : index
    %c2_36 = arith.constant 2 : index
    %c0_37 = arith.constant 0 : index
    %c1_38 = arith.constant 1 : index
    %31 = vector.load %arg3[%c0_35, %c2_36, %c0_37, %c1_38] : memref<1x4x4x90xf32, #tpu.memory_space<vmem>>, vector<1x1x4x72xf32>
    %32 = vector.shape_cast %31 : vector<1x1x4x72xf32> to vector<4x72xf32>
    %c5 = arith.constant 5 : index
    %c0_39 = arith.constant 0 : index
    %c0_40 = arith.constant 0 : index
    %33 = vector.load %arg4[%c5, %c0_39, %c0_40] : memref<9x8x4xf32, #tpu.memory_space<vmem>>, vector<1x8x4xf32>
    %34 = vector.shape_cast %33 : vector<1x8x4xf32> to vector<8x4xf32>
    %cst_41 = arith.constant dense<0.000000e+00> : vector<8x72xf32>
    %35 = tpu.matmul %34, %32, %cst_41 {dimension_numbers = #tpu.dot_dimension_numbers<[1], [0], [0], [1], [0, 0, 1, 1], [], []>} : vector<8x4xf32>, vector<4x72xf32>, vector<8x72xf32> -> vector<8x72xf32>
    %36 = arith.addf %30, %35 : vector<8x72xf32>
    %c0_42 = arith.constant 0 : index
    %c0_43 = arith.constant 0 : index
    %c0_44 = arith.constant 0 : index
    %c9 = arith.constant 9 : index
    %37 = vector.load %arg3[%c0_42, %c0_43, %c0_44, %c9] : memref<1x4x4x90xf32, #tpu.memory_space<vmem>>, vector<1x1x4x72xf32>
    %38 = vector.shape_cast %37 : vector<1x1x4x72xf32> to vector<4x72xf32>
    %c6 = arith.constant 6 : index
    %c0_45 = arith.constant 0 : index
    %c0_46 = arith.constant 0 : index
    %39 = vector.load %arg4[%c6, %c0_45, %c0_46] : memref<9x8x4xf32, #tpu.memory_space<vmem>>, vector<1x8x4xf32>
    %40 = vector.shape_cast %39 : vector<1x8x4xf32> to vector<8x4xf32>
    %cst_47 = arith.constant dense<0.000000e+00> : vector<8x72xf32>
    %41 = tpu.matmul %40, %38, %cst_47 {dimension_numbers = #tpu.dot_dimension_numbers<[1], [0], [0], [1], [0, 0, 1, 1], [], []>} : vector<8x4xf32>, vector<4x72xf32>, vector<8x72xf32> -> vector<8x72xf32>
    %42 = arith.addf %36, %41 : vector<8x72xf32>
    %c0_48 = arith.constant 0 : index
    %c1_49 = arith.constant 1 : index
    %c0_50 = arith.constant 0 : index
    %c9_51 = arith.constant 9 : index
    %43 = vector.load %arg3[%c0_48, %c1_49, %c0_50, %c9_51] : memref<1x4x4x90xf32, #tpu.memory_space<vmem>>, vector<1x1x4x72xf32>
    %44 = vector.shape_cast %43 : vector<1x1x4x72xf32> to vector<4x72xf32>
    %c7 = arith.constant 7 : index
    %c0_52 = arith.constant 0 : index
    %c0_53 = arith.constant 0 : index
    %45 = vector.load %arg4[%c7, %c0_52, %c0_53] : memref<9x8x4xf32, #tpu.memory_space<vmem>>, vector<1x8x4xf32>
    %46 = vector.shape_cast %45 : vector<1x8x4xf32> to vector<8x4xf32>
    %cst_54 = arith.constant dense<0.000000e+00> : vector<8x72xf32>
    %47 = tpu.matmul %46, %44, %cst_54 {dimension_numbers = #tpu.dot_dimension_numbers<[1], [0], [0], [1], [0, 0, 1, 1], [], []>} : vector<8x4xf32>, vector<4x72xf32>, vector<8x72xf32> -> vector<8x72xf32>
    %48 = arith.addf %42, %47 : vector<8x72xf32>
    %c0_55 = arith.constant 0 : index
    %c0_56 = arith.constant 0 : index
    %c0_57 = arith.constant 0 : index
    %c10 = arith.constant 10 : index
    %49 = vector.load %arg3[%c0_55, %c0_56, %c0_57, %c10] : memref<1x4x4x90xf32, #tpu.memory_space<vmem>>, vector<1x1x4x72xf32>
    %50 = vector.shape_cast %49 : vector<1x1x4x72xf32> to vector<4x72xf32>
    %c8 = arith.constant 8 : index
    %c0_58 = arith.constant 0 : index
    %c0_59 = arith.constant 0 : index
    %51 = vector.load %arg4[%c8, %c0_58, %c0_59] : memref<9x8x4xf32, #tpu.memory_space<vmem>>, vector<1x8x4xf32>
    %52 = vector.shape_cast %51 : vector<1x8x4xf32> to vector<8x4xf32>
    %cst_60 = arith.constant dense<0.000000e+00> : vector<8x72xf32>
    %53 = tpu.matmul %52, %50, %cst_60 {dimension_numbers = #tpu.dot_dimension_numbers<[1], [0], [0], [1], [0, 0, 1, 1], [], []>} : vector<8x4xf32>, vector<4x72xf32>, vector<8x72xf32> -> vector<8x72xf32>
    %54 = arith.addf %48, %53 : vector<8x72xf32>
    %c0_61 = arith.constant 0 : index
    %c0_62 = arith.constant 0 : index
    %55 = vector.load %arg5[%c0_61, %c0_62] : memref<8x1xf32, #tpu.memory_space<vmem>>, vector<8x1xf32>
    %56 = vector.broadcast %55 : vector<8x1xf32> to vector<8x72xf32>
    %57 = arith.addf %54, %56 : vector<8x72xf32>
    %cst_63 = arith.constant 0.000000e+00 : f32
    %58 = vector.broadcast %cst_63 : f32 to vector<8x72xf32>
    %59 = arith.maximumf %57, %58 : vector<8x72xf32>
    %c0_64 = arith.constant 0 : index
    %c0_65 = arith.constant 0 : index
    %60 = vector.load %arg2[%c0_64, %c0_65] : memref<1x72xi32, #tpu.memory_space<vmem>>, vector<1x72xi32>
    %61 = arith.index_cast %arg0 : i32 to index
    %62 = memref.load %arg1[%61] : memref<2xi32, #tpu.memory_space<smem>>
    %63 = vector.broadcast %62 : i32 to vector<1x72xi32>
    %64 = arith.cmpi slt, %60, %63 : vector<1x72xi32>
    %cst_66 = arith.constant 0.000000e+00 : f32
    %65 = vector.shape_cast %64 : vector<1x72xi1> to vector<1x72xi1>
    %66 = vector.broadcast %65 : vector<1x72xi1> to vector<8x72xi1>
    %67 = vector.broadcast %cst_66 : f32 to vector<8x72xf32>
    %68 = arith.select %66, %59, %67 : vector<8x72xi1>, vector<8x72xf32>
    %c0_67 = arith.constant 0 : index
    %c0_68 = arith.constant 0 : index
    %c0_69 = arith.constant 0 : index
    %69 = vector.load %arg6[%c0_67, %c0_68, %c0_69] : memref<1x8x72xf32, #tpu.memory_space<vmem>>, vector<1x8x72xf32>
    %70 = vector.shape_cast %69 : vector<1x8x72xf32> to vector<8x72xf32>
    %71 = vector.shape_cast %68 : vector<8x72xf32> to vector<1x8x72xf32>
    tpu.vector_store %arg6[%c0_67, %c0_68, %c0_69], %71 {strides = array<i32>} : memref<1x8x72xf32, #tpu.memory_space<vmem>>, vector<1x8x72xf32>,
    return
  }
  func.func @transform_0(%arg0: i32, %arg1: memref<2xi32, #tpu.memory_space<smem>>) -> (i32, i32) {
    %c0_i32 = arith.constant 0 : i32
    %c0_i32_0 = arith.constant 0 : i32
    %c0_i32_1 = arith.constant 0 : i32
    return %c0_i32, %c0_i32_0 : i32, i32
  }
  func.func @transform_1(%arg0: i32, %arg1: memref<2xi32, #tpu.memory_space<smem>>) -> (i32, i32, i32, i32) {
    %c0_i32 = arith.constant 0 : i32
    %c0_i32_0 = arith.constant 0 : i32
    %c0_i32_1 = arith.constant 0 : i32
    %c0_i32_2 = arith.constant 0 : i32
    return %arg0, %c0_i32, %c0_i32_0, %c0_i32_1 : i32, i32, i32, i32
  }
  func.func @transform_2(%arg0: i32, %arg1: memref<2xi32, #tpu.memory_space<smem>>) -> (i32, i32, i32) {
    %c0_i32 = arith.constant 0 : i32
    %c0_i32_0 = arith.constant 0 : i32
    %c0_i32_1 = arith.constant 0 : i32
    %c0_i32_2 = arith.constant 0 : i32
    return %c0_i32, %c0_i32_0, %c0_i32_1 : i32, i32, i32
  }
  func.func @transform_3(%arg0: i32, %arg1: memref<2xi32, #tpu.memory_space<smem>>) -> (i32, i32) {
    %c0_i32 = arith.constant 0 : i32
    %c0_i32_0 = arith.constant 0 : i32
    %c0_i32_1 = arith.constant 0 : i32
    return %c0_i32, %c0_i32_0 : i32, i32
  }
  func.func @transform_4(%arg0: i32, %arg1: memref<2xi32, #tpu.memory_space<smem>>) -> (i32, i32, i32) {
    %c0_i32 = arith.constant 0 : i32
    %c0_i32_0 = arith.constant 0 : i32
    %c0_i32_1 = arith.constant 0 : i32
    return %arg0, %c0_i32, %c0_i32_0 : i32, i32, i32
  }
}

</mosaic_0001>

<bundles_post_ra>
// kernel: tpu_custom_call.1
= control target key start
LH: loop header
LB: loop body
LE: loop exit
PB: predicated region body
PF: predicated region fallthrough
CT: control target
= control target key end

     0   :  { %s1478_s0 = inlined_call_operand.vmem [shape: s32[2], index: 0, kind: input, shape index: {}]   ;;  %s1479_s1 = inlined_call_operand.vmem [shape: s32[1,72], index: 1, kind: input, shape index: {}]   ;;  %s1480_s2 = inlined_call_operand.vmem [shape: f32[2,4,4,90], index: 2, kind: input, shape index: {}]   ;;  %s1481_s3 = inlined_call_operand.vmem [shape: f32[9,8,4], index: 3, kind: input, shape index: {}]   ;;  %s1482_s4 = inlined_call_operand.vmem [shape: f32[8,1], index: 4, kind: input, shape index: {}]   ;;  %s1483_s5 = inlined_call_operand.hbm [shape: f32[2,8,72], index: 5, kind: output, shape index: {}]  }
   0x1   :  { %s10_s20 = sshll.u32 %s1478_s0, 4  ;;  %s11_s20 = int_to_ptr.vmem [resolvable:$true] %s10_s20 }
   0x2   :  { %s1171_s21 = scalar_lea.vmem %s11_s20, 16  ;;  %p1176_p1 = scmp.lt.s32.totalorder %s11_s20, %s11_s20 }
   0x3   :  { %p1172_p0 = scmp.ne.s32.totalorder %s11_s20, %s1171_s21  ;;  %p1177_p2 = scmp.lt.s32.totalorder %s1171_s21, %s1171_s21 }
   0x5   :  { %p1178_p3 = por %p1177_p2, %p1176_p1 }
   0x7   :  { %p1179_p4 = pnand %p1178_p3, %p1172_p0 }
   0x9   :  { %1182 = shalt.err (!%p1179_p4)  }
   0xa   :  { %s1249_s22 = smov [#allocation3]  }
   0xb   :  { %13 = dma.vmem_to_smem %s11_s20, 16, %s1249_s22, [#allocation2] }
   0xc   :  { %1227 = dma.done.wait [#allocation2], 16 }
   0xd   :  { %1228 = vsyncadd [#allocation2], 4294967280 }
   0xe   :  { %15 = sfence }
   0xf   :  { %16 = vsyncpa [#allocation5], 0 }
  0x10   :  { %18 = vsyncpa [#allocation5 + $0x1], 0  ;;  %s1290_s23 = smov 0   ;;  %s1292_s24 = smov 0  }
  0x11   :  { %s1294_s0 = smov 0   ;;  %s1296_s25 = smov 0  }
  0x12 LB: > { %s1311_s26 = sadd.s32 4294967295, %s1247_s25   ;;  %s1019_s27 = sadd.s32 4294967294, %s1247_s25   ;;  %s1247_s25 = sphi %s1296_s25, %s1489_s25   ;;  %s1243_s0 = sphi %s1294_s0, %s1488_s0   ;;  %s1239_s24 = sphi %s1292_s24, %s1487_s24   ;;  %s1235_s23 = sphi %s1290_s23, %s1486_s23  }
  0x13   : > { %s1315_s28 = sadd.s32 1, %s1247_s25   ;;  %s120_s29 = sadd.s32 1, %s1243_s0 }
  0x14   : > { %s117_s30 = ssub.s32 %s1247_s25, %s1315_s28  ;;  %p130_p5 = scmp.ne.s32.totalorder %s1243_s0, %s1239_s24 }
  0x15   : > { %p118_p6 = scmp.eq.s32.totalorder %s117_s30, 0  ;;  %p131_p7 = scmp.eq.s32.totalorder %s1311_s26, 1 }
  0x16   : > { %p136_p8 = scmp.ne.s32.totalorder %s1239_s24, %s1235_s23  ;;  %p137_p9 = scmp.eq.s32.totalorder %s1019_s27, 1 }
  0x17   : > { %s1326_s6 = scalar_select %p118_p6, %s1243_s0, %s120_s29  }
  0x18   : > { %p1328_p10 = por %p131_p7, %p130_p5  ;;  %p1332_p11 = por %p137_p9, %p136_p8 }
  0x19   : > { %p1022_p12 = scmp.ge.s32.totalorder %s1247_s25, 1  ;;  %p172_p13 = scmp.lt.s32.totalorder %s1247_s25, 3 }
  0x1b   : > { %p173_p0 = pnand %p1022_p12, %p172_p13 }
  0x1c   : > { %p198_p1 = scmp.lt.s32.totalorder (!%p173_p0), %s1311_s26, 1  ;;  %v1250_v0 = vmov (!%p173_p0), 0.0   ;;  %vm1251_vm0 = vmmov (!%p173_p0), 0   ;;  %vm213_vm1 = vcmask (!%p173_p0), 1043456   ;;  %v1027_v2 = vld [vmem:[%s1481_s3 + $0x8] sm:$0xff] (!%p173_p0)  ;;  %vm209_vm2 = vcmask (!%p173_p0), 31744  }
  0x1d   : > { %176 = sbr.rel (%p173_p0) target bundleno = 402 (0x192), region = 36  ;;  %1078 = vmatprep.subr.mxu0 (!%p173_p0), %v1250_v0  ;;  %1080 = vmatprep.mubr.msk.f32.mxu0 (!%p173_p0), %vm1251_vm0, %v1250_v0  ;;  %s1252_s16 = smov (!%p173_p0), 127   ;;  %v204_v4 = vld [vmem:[%s1481_s3] sm:$0xff] (!%p173_p0)  ;;  %v1036_v6 = vld [vmem:[%s1481_s3 + $0x18] sm:$0xff] (!%p173_p0)  ;;  %v1254_v7 = vmov (!%p173_p0), 0   ;;  %v1032_v9 = vld [vmem:[%s1481_s3 + $0x10] sm:$0xff] (!%p173_p0)  ;;  %v938_v29 = vlaneseq (!%p173_p0) }
  0x1e   : > { %1083 = vmatprep.subr.mxu1 (!%p173_p0), %v1250_v0  ;;  %1085 = vmatprep.mubr.msk.f32.mxu1 (!%p173_p0), %vm1251_vm0, %v1250_v0  ;;  %s1253_s17 = smov (!%p173_p0), 119   ;;  %v925_v8 = vld [vmem:[%s1482_s4] sm:$0xff] (!%p173_p0)  ;;  %s1255_s29 = smov (!%p173_p0), 118   ;;  %v1043_v14 = vld [vmem:[%s1481_s3 + $0x28] sm:$0xff] (!%p173_p0)  ;;  %v1046_v17 = vld [vmem:[%s1481_s3 + $0x30] sm:$0xff] (!%p173_p0)  ;;  %vm944_vm5 = vcmask (!%p173_p0), 588800  }
  0x1f   : > { %1169 = vset.pattern.permute.xlu1 (!%p173_p0), %v1254_v7  ;;  %1170 = vset.pattern.permute.xlu0 (!%p173_p0), %v1254_v7  ;;  %v1040_v13 = vld [vmem:[%s1481_s3 + $0x20] sm:$0xff] (!%p173_p0)  ;;  %v1049_v18 = vld [vmem:[%s1481_s3 + $0x38] sm:$0xff] (!%p173_p0)  ;;  %s934_s20 = sld [smem:[#allocation3 + %s1311_s26]] (!%p173_p0)  ;;  %v939_v37 = vshrl.u32 (!%p173_p0), %v938_v29, 7  ;;  %s195_s27 = sand.u32 (!%p173_p0), 1, %s1239_s24  }
  0x20   : > { %v1052_v20 = vld [vmem:[%s1481_s3 + $0x40] sm:$0xff] (!%p173_p0)  ;;  %s1056_s30 = sshll.u32 (!%p173_p0), %s1311_s26, 7 }
  0x21   : > { %v933_v32 = vld [vmem:[%s1479_s1] sm:$0x1] (!%p173_p0)  ;;  %v940_v44 = vsub.s32 (!%p173_p0), 0, %v939_v37  ;;  %s1436_s14 = scalar_lea.hbm (!%p173_p0), %s1483_s5, %s1056_s30 }
  0x24   : > { %s199_s9 = scalar_select %p198_p1, %s1311_s26, 1 }
  0x25   : > { %v935_v33 = vstv %s934_s20  ;;  %s1256_s26 = smov [#allocation4]  }
  0x26   : > { %s1059_s10 = sshll.u32 %s199_s9, 4  ;;  %vm936_vm3 = vcmp.lt.s32.totalorder %v933_v32, %v935_v33 }
  0x27   : > { %s1349_s13 = scalar_lea.vmem %s1480_s2, %s1059_s10  ;;  %v937_v45 = vsel %vm936_vm3, 1, %v1254_v7 }
  0x28   : > { %v203_v1 = vld [vmem:[%s1349_s13] sm:$0xf]  ;;  %v1026_v3 = vld [vmem:[%s1349_s13 + $0x4] sm:$0xf]  ;;  %v1035_v5 = vld [vmem:[%s1349_s13 + $0x8] sm:$0xf]  ;;  %v941_v51 = vrot.slane %v937_v45, %v940_v44 }
  0x29   : > { %365 = vrot.lane.b32.xlu0 %v203_v1, %s1252_s16  ;;  %687 = vrot.lane.b32.xlu1 %v203_v1, %s1253_s17  ;;  %v1039_v11 = vld [vmem:[%s1349_s13 + $0xc] sm:$0xf]  ;;  %s947_s13 = scalar_lea.sflag [#allocation5], %s195_s27 }
  0x2a   : > { %1079 = vmatpush3.msk.msra.mxu0 %vm213_vm1, %v1026_v3  ;;  %1084 = vmatpush3.msk.msra.mxu1 %vm213_vm1, %v203_v1  ;;  %vm942_vm4 = vcmp.eq.s32.totalorder %v941_v51, 1 }
  0x2b   : > { %1081 = vmatmul.mubr.msk.f32.vlgmr.msra.gmra.mrb[0].mxu0 %vm209_vm2, %v1027_v2  ;;  %1088 = vmatprep.subr.mxu0 %v1250_v0 }
  0x2c   : > { %1086 = vmatmul.mubr.msk.f32.vlgmr.msra.gmra.mrb[0].mxu1 %vm209_vm2, %v204_v4  ;;  %1090 = vmatprep.mubr.msk.f32.mxu0 %vm1251_vm0, %v1250_v0 }
  0x2d   : > { %607 = vrot.lane.b32.xlu0 %v1035_v5, %s1252_s16  ;;  %767 = vrot.lane.b32.xlu1 %v1026_v3, %s1253_s17  ;;  %s1187_s16 = sshll.u32 %s1256_s26, 4  ;;  %s1188_s16 = int_to_ptr.vmem [resolvable:$false] %s1187_s16 }
  0x2e   : > { %1093 = vmatprep.subr.mxu1 %v1250_v0  ;;  %1095 = vmatprep.mubr.msk.f32.mxu1 %vm1251_vm0, %v1250_v0  ;;  %s1189_s17 = scalar_lea.vmem %s1188_s16, 256 }
  0x2f   : > { %1094 = vmatpush3.msk.msra.mxu1 %vm213_vm1, %v1035_v5 }
  0x30   : > { %1096 = vmatmul.mubr.msk.f32.vlgmr.msra.gmra.mrb[2].mxu1 %vm209_vm2, %v1036_v6  ;;  %1103 = vmatprep.subr.mxu1 %v1250_v0 }
  0x31   : > { %847 = vrot.lane.b32.xlu0 %v203_v1, %s1255_s29  ;;  %1105 = vmatprep.mubr.msk.f32.mxu1 %vm1251_vm0, %v1250_v0  ;;  %s1023_s29 = sshll.u32 %s195_s27, 3 }
  0x32   : > { %928 = vperm.xlu1 %1169, %v925_v8   ;;  %s197_s9 = scalar_lea.vmem [#allocation4], %s1023_s29 }
  0x33   : > { %s960_s10 = sshll.u32 %s197_s9, 4  ;;  %s1438_s10 = int_to_ptr.vmem [resolvable:$true] %s960_s10 }
  0x34   : > { %s1183_s15 = scalar_lea.vmem %s1438_s10, 128  ;;  %p1190_p5 = scmp.lt.s32.totalorder %s1438_s10, %s1188_s16 }
  0x35   : > { %p1184_p2 = scmp.ne.s32.totalorder %s1438_s10, %s1183_s15  ;;  %p1191_p6 = scmp.lt.s32.totalorder %s1189_s17, %s1183_s15 }
  0x37   : > { %p1185_p3 = pnand %p1184_p2, %p1328_p10  ;;  %p1192_p7 = por %p1191_p6, %p1190_p5 }
  0x39   : > { %p1186_p4 = pneg %p1185_p3 }
  0x3b   : > { %p1193_p8 = pnand %p1192_p7, %p1186_p4 }
  0x9b   : > { %v366_v10 = vpop.permute.xlu0 %365  ;;  %v688_v12 = vpop.permute.xlu1 %687 }
  0x9c   : > { %1089 = vmatpush3.msk.msra.mxu0 %vm213_vm1, %v366_v10 }
  0x9d   : > { %1091 = vmatmul.mubr.msk.f32.vlgmr.msra.gmra.mrb[2].mxu0 %vm209_vm2, %v1032_v9  ;;  %1098 = vmatprep.subr.mxu0 %v1250_v0 }
  0x9e   : > { %1099 = vmatpush3.msk.msra.mxu0 %vm213_vm1, %v1039_v11  ;;  %1100 = vmatprep.mubr.msk.f32.mxu0 %vm1251_vm0, %v1250_v0 }
  0x9f   : > { %1108 = vmatprep.subr.mxu0 %v1250_v0  ;;  %v608_v15 = vpop.permute.xlu0 %607  ;;  %v768_v16 = vpop.permute.xlu1 %767 }
  0xa0   : > { %1104 = vmatpush3.msk.msra.mxu1 %vm213_vm1, %v608_v15 }
  0xa1   : > { %1101 = vmatmul.mubr.msk.f32.vlgmr.msra.gmra.mrb[4].mxu0 %vm209_vm2, %v1040_v13  ;;  %1106 = vmatmul.mubr.msk.f32.vlgmr.msra.gmra.mrb[4].mxu1 %vm209_vm2, %v1043_v14 }
  0xa2   : > { %1109 = vmatpush3.msk.msra.mxu0 %vm213_vm1, %v688_v12  ;;  %1110 = vmatprep.mubr.msk.f32.mxu0 %vm1251_vm0, %v1250_v0 }
  0xa3   : > { %1113 = vmatprep.subr.mxu1 %v1250_v0  ;;  %1118 = vmatprep.subr.mxu0 %v1250_v0  ;;  %v848_v19 = vpop.permute.xlu0 %847 }
  0xa4   : > { %1114 = vmatpush3.msk.msra.mxu1 %vm213_vm1, %v768_v16  ;;  %1115 = vmatprep.mubr.msk.f32.mxu1 %vm1251_vm0, %v1250_v0 }
  0xa5   : > { %1111 = vmatmul.mubr.msk.f32.vlgmr.msra.gmra.mrb[6].mxu0 %vm209_vm2, %v1046_v17  ;;  %1116 = vmatmul.mubr.msk.f32.vlgmr.msra.gmra.mrb[6].mxu1 %vm209_vm2, %v1049_v18 }
  0xa6   : > { %1119 = vmatpush3.msk.msra.mxu0 %vm213_vm1, %v848_v19  ;;  %1120 = vmatprep.mubr.msk.f32.mxu0 %vm1251_vm0, %v1250_v0 }
  0xa9   : > { %1121 = vmatmul.mubr.msk.f32.vlgmr.msra.gmra.mrb[8].mxu0 %vm209_vm2, %v1052_v20 }
  0xb1   : > { %v929_v52 = vpop.permute.xlu1 %928 }
  0xfe   : > { %v283_v21 = vpop.f32.mrb[0].mxu0 }
  0xff   : > { %v1082_v22 = vpop.f32.mrb[1].mxu0  ;;  %v359_v23 = vpop.f32.mrb[0].mxu1 }
 0x100   : > { %v360_v24 = vadd.f32 %v359_v23, %v283_v21  ;;  %v1087_v25 = vpop.f32.mrb[1].mxu1 }
 0x103   : > { %v519_v26 = vpop.f32.mrb[2].mxu1 }
 0x104   : > { %v1097_v27 = vpop.f32.mrb[3].mxu1 }
 0x170   : > { %v438_v28 = vpop.f32.mrb[2].mxu0 }
 0x171   : > { %v442_v30 = vadd.f32 %v438_v28, %v360_v24  ;;  %v1092_v31 = vpop.f32.mrb[3].mxu0 }
 0x173   : > { %v523_v34 = vadd.f32 %v519_v26, %v442_v30 }
 0x174   : > { %v600_v35 = vpop.f32.mrb[4].mxu0  ;;  %v680_v36 = vpop.f32.mrb[4].mxu1 }
 0x175   : > { %v604_v38 = vadd.f32 %v600_v35, %v523_v34  ;;  %v1102_v39 = vpop.f32.mrb[5].mxu0  ;;  %v1107_v40 = vpop.f32.mrb[5].mxu1 }
 0x177   : > { %v684_v41 = vadd.f32 %v680_v36, %v604_v38 }
 0x178   : > { %v760_v42 = vpop.f32.mrb[6].mxu0  ;;  %v840_v43 = vpop.f32.mrb[6].mxu1 }
 0x179   : > { %v764_v46 = vadd.f32 %v760_v42, %v684_v41  ;;  %v1112_v47 = vpop.f32.mrb[7].mxu0  ;;  %v1117_v48 = vpop.f32.mrb[7].mxu1 }
 0x17b   : > { %v844_v49 = vadd.f32 %v840_v43, %v764_v46 }
 0x17c   : > { %v920_v50 = vpop.f32.mrb[8].mxu0 }
 0x17d   : > { %v924_v53 = vadd.f32 %v920_v50, %v844_v49  ;;  %v1122_v54 = vpop.f32.mrb[9].mxu0 }
 0x17f   : > { %v931_v55 = vadd.f32 %v929_v52, %v924_v53 }
 0x181   : > { %v932_v56 = vmax.f32 %v931_v55, 0.0 }
 0x183   : > { %v943_v57 = vsel %vm942_vm4, %v932_v56, 0.0 }
 0x184   : > { %945 = vst.msk [vmem:[%s197_s9] sm:$0xff] %vm944_vm5, %v943_v57 }
 0x185   : > { %1196 = shalt.err (!%p1193_p8)
}
 0x186   : > { %s1197_s18 = scalar_lea.hbm %s1436_s14, 128  ;;  %s1201_s21 = scalar_lea.hbm %s1483_s5, 256 }
 0x187   : > { %p1198_p9 = scmp.ne.s32.totalorder %s1436_s14, %s1197_s18  ;;  %p1202_p0 = scmp.lt.u32.totalorder %s1436_s14, %s1483_s5 }
 0x188   : > { %p1203_p1 = scmp.lt.u32.totalorder %s1201_s21, %s1197_s18  ;;  %p1205_p3 = scmp.lt.u32.totalorder %s1197_s18, %s1436_s14 }
 0x189   : > { %p1199_p12 = pnand %p1198_p9, %p1328_p10 }
 0x18a   : > { %p1204_p2 = por %p1203_p1, %p1202_p0 }
 0x18b   : > { %p1200_p13 = pneg %p1199_p12 }
 0x18c   : > { %p1206_p4 = por %p1205_p3, %p1204_p2 }
 0x18e   : > { %p1207_p5 = pnand %p1206_p4, %p1200_p13 }
 0x190   : > { %1210 = shalt.err (!%p1207_p5)
}
 0x191   : > { %1123 = dma.vmem_to_hbm [thread:$0]  (%p1328_p10), %s1438_s10, 128, %s1436_s14, %s947_s13  }
 0x192 PF: > { %p1129_p6 = scmp.ge.s32.totalorder %s1247_s25, 2  ;;  %s972_s29 = sand.u32 1, %s1235_s23  }
 0x193   : > { %s973_s30 = scalar_lea.sflag [#allocation5], %s972_s29 }
 0x194   : > { %p1126_p7 = pnand %p1129_p6, %p1332_p11 }
 0x196   : > { %1230 = dma.done.wait (!%p1126_p7), %s973_s30, 128  }
 0x197   : > { %1232 = vsyncadd (!%p1126_p7), %s973_s30, 4294967168  ;;  %p21_p8 = scmp.ge.s32.totalorder %s1315_s28, 4   ;;  %s1486_s23 = smov %s1239_s24 }
 0x198   : > { %s1487_s24 = smov %s1243_s0  ;;  %s1488_s0 = smov %s1326_s6 }
 0x199   : > { %s1489_s25 = smov %s1315_s28  ;;  %23 = sbr.rel (!%p21_p8) target bundleno = 18 (0x12), region = 82 }
 0x1a0   :  { %978 = vsyncpa [#allocation5], 1 }
 0x1a1   :  { %980 = vsyncpa [#allocation5 + $0x1], 1 }

</bundles_post_ra>
